<compile_context>
chip_gen: v7x
topology: tpu7x:2x2x1
jax: 0.10.0
libtpu: 0.0.40
codegen_flags: <defaults>
</compile_context>

<pallas_src>
import jax
import jax.numpy as jnp
from jax.experimental import pallas as pl
from jax.experimental.pallas import tpu as pltpu


def _rope_tables(seq_len: int, dim: int, offset: int, base: int):
    """float32 cos and sign-folded sin tables, shape [seq_len, 1, dim]."""
    buf = jnp.linspace(0.0, -1.0 + 2.0 / dim, dim // 2, dtype=jnp.float32)
    inv_freq = jnp.power(jnp.float32(base), buf)
    inv_freq = jnp.concatenate([inv_freq, inv_freq])            # .repeat(2)
    t = jnp.arange(offset, offset + seq_len, dtype=jnp.float32)
    freqs = t[:, None] * inv_freq[None, :]                       # [S, D]
    cos = jnp.cos(freqs)
    sin = jnp.sin(freqs)
    half = dim // 2
    # rotate_half(x) * sin == roll(x, D/2) * sin_signed  (sign folded into table)
    sin_signed = jnp.concatenate([-sin[:, :half], sin[:, half:]], axis=-1)
    return cos[:, None, :], sin_signed[:, None, :]               # [S, 1, D]


def _choose_seq_tile(seq_len: int, nhead: int, head_dim: int, itemsize: int,
                     block_budget_bytes: int = 2 * 1024 * 1024) -> int:
    """Largest seq tile whose [tS, H, D] x-block stays under ~2 MiB.

    Keeps double-buffered (x + out + tables) comfortably inside the scoped
    VMEM limit on v5e/v6e/v7x while still being big enough to amortize the
    per-grid-step overhead.
    """
    row_bytes = nhead * head_dim * itemsize
    max_rows = max(1, block_budget_bytes // row_bytes)
    if seq_len <= max_rows:
        return seq_len
    # Multiple of 8 so the cos/sin block second-minor dim stays tiling-friendly;
    # a ragged tail block is handled (padded/masked) by Pallas.
    return max(8, (max_rows // 8) * 8)


def _rope_kernel(x_ref, cos_ref, sin_ref, o_ref):
    # x_ref / o_ref : [tS, H, D] tiles;  cos_ref / sin_ref : [tS, 1, D] float32.
    x = x_ref[...].astype(jnp.float32)          # [tS, H, D]
    cos = cos_ref[...]                          # [tS, 1, D], broadcasts over H
    sin_s = sin_ref[...]                        # sign-folded sin
    d = x.shape[-1]
    half = d // 2
    if d % 128 == 0:
        # Lane rotation on the XLU — effectively free on this mem-bound kernel.
        x_swapped = pltpu.roll(x, shift=half, axis=2)
    else:
        # Masked-lane head dims: plain half-swap (sign already folded into sin).
        x_swapped = jnp.concatenate([x[..., half:], x[..., :half]], axis=-1)
    o_ref[...] = (x * cos + x_swapped * sin_s).astype(o_ref.dtype)


def rotary_embeddings(x: jax.Array, offset: int = 0, base: int = 10000) -> jax.Array:
    """x: [batch, seq, nhead, hid] -> same shape, rotary-embedded."""
    B, S, H, D = x.shape
    cos, sin_signed = _rope_tables(S, D, offset, base)           # [S, 1, D] f32
    tS = _choose_seq_tile(S, H, D, jnp.dtype(x.dtype).itemsize)
    grid = (B, pl.cdiv(S, tS))

    return pl.pallas_call(
        _rope_kernel,
        out_shape=jax.ShapeDtypeStruct((B, S, H, D), x.dtype),
        grid=grid,
        in_specs=[
            pl.BlockSpec((None, tS, H, D), lambda b, s: (b, s, 0, 0)),
            pl.BlockSpec((tS, 1, D), lambda b, s: (s, 0, 0)),
            pl.BlockSpec((tS, 1, D), lambda b, s: (s, 0, 0)),
        ],
        out_specs=pl.BlockSpec((None, tS, H, D), lambda b, s: (b, s, 0, 0)),
        compiler_params=pltpu.CompilerParams(
            dimension_semantics=("parallel", "parallel"),
            vmem_limit_bytes=32 * 1024 * 1024,
        ),
    )(x, cos, sin_signed)


def _reference(x, offset: int = 0, base: int = 10000):
    """Plain-JAX mirror of the PyTorch `rotate` (fp32 tables, fp32 math)."""
    B, S, H, D = x.shape
    buf = jnp.linspace(0.0, -1.0 + 2.0 / D, D // 2, dtype=jnp.float32)
    inv_freq = jnp.power(jnp.float32(base), buf)
    inv_freq = jnp.concatenate([inv_freq, inv_freq])
    t = jnp.arange(S + offset, dtype=jnp.float32)
    freqs = t[:, None] * inv_freq[None, :]
    cos = jnp.cos(freqs)[offset:S + offset]
    sin = jnp.sin(freqs)[offset:S + offset]
    xf = x.astype(jnp.float32)
    half = D // 2
    x_rot = jnp.concatenate([-xf[..., half:], xf[..., :half]], axis=-1)
    out = xf * cos[None, :, None, :] + x_rot * sin[None, :, None, :]
    return out.astype(x.dtype)


if __name__ == "__main__":
    key = jax.random.PRNGKey(0)
    k1, k2 = jax.random.split(key)

    # Case 1: original small shapes — f32, head dim < 128 (concat fallback path).
    B, S, H, D = 2, 8, 4, 32
    x = jax.random.normal(k1, (B, S, H, D), dtype=jnp.float32)
    out = jax.block_until_ready(rotary_embeddings(x, offset=0))
    ref = _reference(x, offset=0)
    assert out.shape == x.shape and out.dtype == x.dtype
    assert jnp.allclose(out, ref, atol=1e-5, rtol=1e-5)

    # Case 2: bf16, head dim 128 (lane-dense store + pltpu.roll path), with offset.
    B2, S2, H2, D2 = 2, 128, 4, 128
    x2 = jax.random.normal(k2, (B2, S2, H2, D2), dtype=jnp.bfloat16)
    out2 = jax.block_until_ready(rotary_embeddings(x2, offset=3))
    ref2 = _reference(x2, offset=3)
    assert out2.shape == x2.shape and out2.dtype == x2.dtype
    assert jnp.allclose(out2.astype(jnp.float32), ref2.astype(jnp.float32),
                        atol=2e-2, rtol=2e-2)

    print("KERNEL_OK")
</pallas_src>

<mosaic_0001>
module attributes {stable_mosaic.version = 11 : i64} {
  func.func @_rope_kernel(%arg0: i32, %arg1: i32, %arg2: memref<1x8x4x32xf32, #tpu.memory_space<vmem>>, %arg3: memref<8x1x32xf32, #tpu.memory_space<vmem>>, %arg4: memref<8x1x32xf32, #tpu.memory_space<vmem>>, %arg5: memref<1x8x4x32xf32, #tpu.memory_space<vmem>>) attributes {dimension_semantics = [#tpu.dimension_semantics<parallel>, #tpu.dimension_semantics<parallel>], iteration_bounds = array<i64: 2, 1>, scalar_prefetch = 0 : i64, scratch_operands = 0 : i64, tpu.core_type = #tpu.core_type<tc>, window_params = [{transform_indices = @transform_0, window_bounds = array<i64: 1, 8, 4, 32>}, {transform_indices = @transform_1, window_bounds = array<i64: 8, 1, 32>}, {transform_indices = @transform_2, window_bounds = array<i64: 8, 1, 32>}, {transform_indices = @transform_3, window_bounds = array<i64: 1, 8, 4, 32>}]} {
    %c0 = arith.constant 0 : index
    %c0_0 = arith.constant 0 : index
    %c0_1 = arith.constant 0 : index
    %c0_2 = arith.constant 0 : index
    %0 = vector.load %arg2[%c0, %c0_0, %c0_1, %c0_2] : memref<1x8x4x32xf32, #tpu.memory_space<vmem>>, vector<1x8x4x32xf32>
    %1 = vector.shape_cast %0 : vector<1x8x4x32xf32> to vector<8x4x32xf32>
    %c0_3 = arith.constant 0 : index
    %c0_4 = arith.constant 0 : index
    %c0_5 = arith.constant 0 : index
    %2 = vector.load %arg3[%c0_3, %c0_4, %c0_5] : memref<8x1x32xf32, #tpu.memory_space<vmem>>, vector<8x1x32xf32>
    %c0_6 = arith.constant 0 : index
    %c0_7 = arith.constant 0 : index
    %c0_8 = arith.constant 0 : index
    %3 = vector.load %arg4[%c0_6, %c0_7, %c0_8] : memref<8x1x32xf32, #tpu.memory_space<vmem>>, vector<8x1x32xf32>
    %4 = vector.extract_strided_slice %1 {offsets = [0, 0, 16], sizes = [8, 4, 16], strides = [1, 1, 1]} : vector<8x4x32xf32> to vector<8x4x16xf32>
    %5 = vector.extract_strided_slice %1 {offsets = [0, 0, 0], sizes = [8, 4, 16], strides = [1, 1, 1]} : vector<8x4x32xf32> to vector<8x4x16xf32>
    %6 = tpu.concatenate %4, %5 in 2 : vector<8x4x16xf32>, vector<8x4x16xf32> -> vector<8x4x32xf32>
    %7 = vector.broadcast %2 : vector<8x1x32xf32> to vector<8x4x32xf32>
    %8 = arith.mulf %1, %7 : vector<8x4x32xf32>
    %9 = vector.broadcast %3 : vector<8x1x32xf32> to vector<8x4x32xf32>
    %10 = arith.mulf %6, %9 : vector<8x4x32xf32>
    %11 = arith.addf %8, %10 : vector<8x4x32xf32>
    %c0_9 = arith.constant 0 : index
    %c0_10 = arith.constant 0 : index
    %c0_11 = arith.constant 0 : index
    %c0_12 = arith.constant 0 : index
    %12 = vector.load %arg5[%c0_9, %c0_10, %c0_11, %c0_12] : memref<1x8x4x32xf32, #tpu.memory_space<vmem>>, vector<1x8x4x32xf32>
    %13 = vector.shape_cast %12 : vector<1x8x4x32xf32> to vector<8x4x32xf32>
    %14 = vector.shape_cast %11 : vector<8x4x32xf32> to vector<1x8x4x32xf32>
    tpu.vector_store %arg5[%c0_9, %c0_10, %c0_11, %c0_12], %14 {strides = array<i32>} : memref<1x8x4x32xf32, #tpu.memory_space<vmem>>, vector<1x8x4x32xf32>,
    return
  }
  func.func @transform_0(%arg0: i32, %arg1: i32) -> (i32, i32, i32, i32) {
    %c0_i32 = arith.constant 0 : i32
    %c0_i32_0 = arith.constant 0 : i32
    %c0_i32_1 = arith.constant 0 : i32
    return %arg0, %arg1, %c0_i32, %c0_i32_0 : i32, i32, i32, i32
  }
  func.func @transform_1(%arg0: i32, %arg1: i32) -> (i32, i32, i32) {
    %c0_i32 = arith.constant 0 : i32
    %c0_i32_0 = arith.constant 0 : i32
    %c0_i32_1 = arith.constant 0 : i32
    return %arg1, %c0_i32, %c0_i32_0 : i32, i32, i32
  }
  func.func @transform_2(%arg0: i32, %arg1: i32) -> (i32, i32, i32) {
    %c0_i32 = arith.constant 0 : i32
    %c0_i32_0 = arith.constant 0 : i32
    %c0_i32_1 = arith.constant 0 : i32
    return %arg1, %c0_i32, %c0_i32_0 : i32, i32, i32
  }
  func.func @transform_3(%arg0: i32, %arg1: i32) -> (i32, i32, i32, i32) {
    %c0_i32 = arith.constant 0 : i32
    %c0_i32_0 = arith.constant 0 : i32
    %c0_i32_1 = arith.constant 0 : i32
    return %arg0, %arg1, %c0_i32, %c0_i32_0 : i32, i32, i32, i32
  }
}

</mosaic_0001>

<bundles_post_ra>
// kernel: tpu_custom_call.1
= control target key start
LH: loop header
LB: loop body
LE: loop exit
PB: predicated region body
PF: predicated region fallthrough
CT: control target
= control target key end

     0   :  { %8 = vsyncpa [#allocation3], 0  ;;  %s1230_s0 = inlined_call_operand.hbm [shape: f32[2,8,4,32], index: 0, kind: input, shape index: {}]   ;;  %s1231_s1 = inlined_call_operand.hbm [shape: f32[8,1,32], index: 1, kind: input, shape index: {}]   ;;  %s1232_s2 = inlined_call_operand.hbm [shape: f32[8,1,32], index: 2, kind: input, shape index: {}]   ;;  %s1233_s3 = inlined_call_operand.hbm [shape: f32[2,8,4,32], index: 3, kind: output, shape index: {}]  }
   0x1   :  { %10 = vsyncpa [#allocation3 + $0x1], 0 }
   0x2   :  { %11 = vsyncpa [#allocation6], 0 }
   0x3   :  { %12 = vsyncpa [#allocation4], 0 }
   0x4   :  { %14 = vsyncpa [#allocation4 + $0x1], 0  ;;  %s934_s12 = smov 0   ;;  %s936_s13 = smov 0  }
   0x5   :  { %s938_s14 = smov 0   ;;  %s940_s15 = smov 0  }
   0x6   :  { %s942_s16 = smov 0   ;;  %s944_s17 = smov 0  }
   0x7 LB: > { %s600_s18 = sadd.s32 4294967295, %s900_s17   ;;  %s601_s19 = sadd.s32 4294967294, %s900_s17   ;;  %s900_s17 = sphi %s944_s17, %s20_s17   ;;  %s896_s16 = sphi %s942_s16, %s1255_s16   ;;  %s892_s15 = sphi %s940_s15, %s1254_s15   ;;  %s888_s14 = sphi %s938_s14, %s1253_s14   ;;  %s884_s13 = sphi %s936_s13, %s1252_s13   ;;  %s880_s12 = sphi %s934_s12, %s1251_s12  }
   0x8   : > { %p54_p0 = scmp.ne.s32.totalorder %s884_s13, %s880_s12  ;;  %p968_p1 = scmp.eq.s32.totalorder %s600_s18, 0 }
   0x9   : > { %p972_p2 = scmp.eq.s32.totalorder %s600_s18, 1  ;;  %p138_p3 = scmp.eq.s32.totalorder %s601_s19, 1 }
   0xa   : > { %s1238_s20 = scalar_select %p968_p1, 1, 0 }
   0xb   : > { %p978_p4 = por %p968_p1, %p54_p0  ;;  %p602_p5 = scmp.ge.s32.totalorder %s900_s17, 1 }
   0xc   : > { %p983_p6 = por %p138_p3, %p54_p0  ;;  %p145_p7 = scmp.lt.s32.totalorder %s900_s17, 3 }
   0xd   : > { %s1240_s22 = scalar_select %p978_p4, 1, 0 }
   0xe   : > { %s1241_s23 = scalar_select %p983_p6, 1, 0 }
   0xf   : > { %p988_p8 = pnand %p602_p5, %p145_p7  ;;  %s902_s25 = smov [#allocation5]  }
  0x10   : > { %s160_s26 = sshll.u32 %s902_s25, 4  ;;  %s903_s28 = smov [#allocation7]   ;;  %s992_s26 = int_to_ptr.vmem [resolvable:$true] %s160_s26 }
  0x11   : > { %p649_p9 = pneg %p988_p8  ;;  %s176_s29 = sshll.u32 %s903_s28, 4  ;;  %s1003_s29 = int_to_ptr.vmem [resolvable:$true] %s176_s29 }
  0x12   : > { %s728_s5 = scalar_lea.hbm %s1231_s1, 128 }
  0x13   : > { %p999_p11 = pnand %p649_p9, %p968_p1  ;;  %p729_p12 = scmp.ne.s32.totalorder %s1231_s1, %s728_s5 }
  0x14   : > { %p735_p5 = scmp.lt.u32.totalorder %s728_s5, %s1231_s1 }
  0x15   : > { %p730_p13 = pneg %p999_p11 }
  0x17   : > { %p731_p0 = pnand %p730_p13, %p729_p12 }
  0x19   : > { %p732_p3 = pneg %p731_p0 }
  0x1b   : > { %p737_p7 = pnand %p735_p5, %p732_p3 }
  0x1d   : > { %740 = shalt.err (!%p737_p7)
}
  0x1e   : > { %s741_s10 = scalar_lea.vmem %s992_s26, 128  ;;  %p749_p1 = scmp.lt.s32.totalorder %s992_s26, %s992_s26 }
  0x1f   : > { %p742_p9 = scmp.ne.s32.totalorder %s992_s26, %s741_s10  ;;  %p750_p12 = scmp.lt.s32.totalorder %s741_s10, %s741_s10 }
  0x21   : > { %p744_p10 = pnand %p742_p9, %p730_p13  ;;  %p751_p0 = por %p750_p12, %p749_p1 }
  0x23   : > { %p745_p6 = pneg %p744_p10 }
  0x25   : > { %p752_p4 = pnand %p751_p0, %p745_p6 }
  0x27   : > { %755 = shalt.err (!%p752_p4)
}
  0x28   : > { %s904_s11 = smov 16   ;;  %s905_s18 = smov 1  }
  0x29   : > { %652 = dma.hbm_to_vmem [thread:$0]  (!%p999_p11), %s1231_s1, 128, %s992_s26, [#allocation6], %s904_s11, %s904_s11, %s905_s18  }
  0x2a   : > { %s756_s4 = scalar_lea.hbm %s1232_s2, 128 }
  0x2b   : > { %p757_p1 = scmp.ne.s32.totalorder %s1232_s2, %s756_s4  ;;  %p763_p10 = scmp.lt.u32.totalorder %s756_s4, %s1232_s2 }
  0x2d   : > { %p759_p4 = pnand %p757_p1, %p730_p13 }
  0x2f   : > { %p760_p6 = pneg %p759_p4 }
  0x31   : > { %p765_p3 = pnand %p763_p10, %p760_p6 }
  0x33   : > { %768 = shalt.err (!%p765_p3)
}
  0x34   : > { %s769_s26 = scalar_lea.vmem %s1003_s29, 128  ;;  %p777_p12 = scmp.lt.s32.totalorder %s1003_s29, %s1003_s29 }
  0x35   : > { %p770_p5 = scmp.ne.s32.totalorder %s1003_s29, %s769_s26  ;;  %p778_p0 = scmp.lt.s32.totalorder %s769_s26, %s769_s26 }
  0x37   : > { %p772_p7 = pnand %p770_p5, %p730_p13  ;;  %p779_p1 = por %p778_p0, %p777_p12 }
  0x39   : > { %p773_p9 = pneg %p772_p7 }
  0x3b   : > { %p780_p4 = pnand %p779_p1, %p773_p9 }
  0x3d   : > { %783 = shalt.err (!%p780_p4)
}
  0x3e   : > { %655 = dma.hbm_to_vmem [thread:$0]  (!%p999_p11), %s1232_s2, 128, %s1003_s29, [#allocation6], %s904_s11, %s904_s11, %s905_s18  }
  0x3f   : > { %s32_s19 = sadd.s32 1, %s896_s16  ;;  %s41_s25 = sadd.s32 1, %s888_s14 }
  0x40   : > { %p34_p13 = scmp.ge.s32.totalorder %s32_s19, 2  ;;  %p48_p6 = scmp.ne.s32.totalorder %s888_s14, %s884_s13 }
  0x41   : > { %p49_p10 = scmp.eq.s32.totalorder %s900_s17, 0  ;;  %p666_p3 = scmp.lt.s32.totalorder %s900_s17, 2 }
  0x42   : > { %s1257_s19 = smov (%p34_p13, %s32_s19), 0  ;;  %p1067_p7 = por %p972_p2, %p48_p6 }
  0x43   : > { %p50_p5 = por %p49_p10, %p48_p6  ;;  %s36_s28 = ssub.s32 %s896_s16, %s1257_s19 }
  0x44   : > { %s1244_s27 = scalar_select %p1067_p7, 1, 0 }
  0x45   : > { %s190_s30 = sand.u32 1, %s888_s14   ;;  %p39_p9 = scmp.eq.s32.totalorder %s36_s28, 0 }
  0x46   : > { %s606_s29 = sshll.u32 %s190_s30, 5  ;;  %s635_s11 = sshll.u32 %s896_s16, 9 }
  0x47   : > { %s1076_s18 = scalar_select %p39_p9, %s888_s14, %s41_s25  }
  0x48   : > { %s1081_s6 = scalar_lea.hbm %s1230_s0, %s635_s11  ;;  %s194_s21 = scalar_lea.vmem [#allocation2], %s606_s29 }
  0x49   : > { %s203_s7 = sshll.u32 %s194_s21, 4  ;;  %p1085_p2 = pnand %p666_p3, %p50_p5  ;;  %s1089_s7 = int_to_ptr.vmem [resolvable:$true] %s203_s7 }
  0x4a   : > { %s1091_s26 = scalar_lea.sflag [#allocation3], %s190_s30  ;;  %s784_s9 = scalar_lea.hbm %s1081_s6, 512 }
  0x4b   : > { %p785_p11 = scmp.ne.s32.totalorder %s1081_s6, %s784_s9  ;;  %p786_p12 = pneg %p1085_p2 }
  0x4c   : > { %s789_s28 = scalar_lea.hbm %s1230_s0, 1024  ;;  %p790_p4 = scmp.lt.u32.totalorder %s1081_s6, %s1230_s0 }
  0x4d   : > { %p787_p0 = pnand %p786_p12, %p785_p11  ;;  %p791_p13 = scmp.lt.u32.totalorder %s789_s28, %s784_s9 }
  0x4e   : > { %p793_p10 = scmp.lt.u32.totalorder %s784_s9, %s1081_s6 }
  0x4f   : > { %p788_p1 = pneg %p787_p0  ;;  %p792_p6 = por %p791_p13, %p790_p4 }
  0x51   : > { %p794_p3 = por %p793_p10, %p792_p6 }
  0x53   : > { %p795_p5 = pnand %p794_p3, %p788_p1 }
  0x55   : > { %798 = shalt.err (!%p795_p5)
}
  0x56   : > { %s799_s30 = scalar_lea.vmem %s1089_s7, 512  ;;  %s906_s4 = smov [#allocation2]  }
  0x57   : > { %p800_p9 = scmp.ne.s32.totalorder %s1089_s7, %s799_s30  ;;  %s804_s5 = sshll.u32 %s906_s4, 4  ;;  %s805_s5 = int_to_ptr.vmem [resolvable:$false] %s804_s5 }
  0x58   : > { %s806_s21 = scalar_lea.vmem %s805_s5, 1024  ;;  %p807_p7 = scmp.lt.s32.totalorder %s1089_s7, %s805_s5 }
  0x59   : > { %p802_p11 = pnand %p800_p9, %p786_p12  ;;  %p808_p4 = scmp.lt.s32.totalorder %s806_s21, %s799_s30 }
  0x5b   : > { %p803_p0 = pneg %p802_p11  ;;  %p809_p13 = por %p808_p4, %p807_p7 }
  0x5d   : > { %p810_p6 = pnand %p809_p13, %p803_p0 }
  0x5f   : > { %813 = shalt.err (!%p810_p6)
}
  0x60   : > { %s907_s9 = smov 64   ;;  %s908_s10 = smov 4  }
  0x61   : > { %659 = dma.hbm_to_vmem [thread:$0]  (!%p1085_p2), %s1081_s6, 512, %s1089_s7, %s1091_s26, %s907_s9, %s907_s9, %s908_s10  }
  0x62   : > { %215 = sbr.rel (%p988_p8) target bundleno = 274 (0x112), region = 32  ;;  %s1122_s25 = sand.u32 (!%p988_p8), 1, %s884_s13  }
  0x63   : > { %s610_s28 = sshll.u32 (!%p988_p8), %s1122_s25, 5  ;;  %s218_s29 = scalar_lea.sflag (!%p988_p8), [#allocation3], %s1122_s25 }
  0x64   : > { %s221_s11 = scalar_lea.vmem (!%p988_p8), [#allocation2], %s610_s28  ;;  %p1246_p7 = scmp.ne.s32.totalorder (!%p988_p8), %s1240_s22, 0 }
  0x69   : > { %867 = dma.done.wait (%p1246_p7), %s218_s29, 512  }
  0x6a   : > { %869 = vsyncadd (%p1246_p7), %s218_s29, 4294966784  ;;  %p1247_p2 = scmp.ne.s32.totalorder %s1238_s20, 0 }
  0x6c   : > { %871 = dma.done.wait (%p1247_p2), [#allocation6], 256  }
  0x6d   : > { %873 = vsyncadd (%p1247_p2), [#allocation6], 4294967040  ;;  %v258_v0 = vld [vmem:[%s221_s11 + $0x8] sm:$0xf]  ;;  %v256_v1 = vld [vmem:[%s221_s11] sm:$0xf] }
  0x6e   : > { %s909_s24 = smov 112   ;;  %v259_v2 = vld [vmem:[%s221_s11 + $0xc] sm:$0xf]  ;;  %v257_v3 = vld [vmem:[%s221_s11 + $0x4] sm:$0xf]  ;;  %s910_s20 = smov 16  }
  0x6f   : > { %292 = vrot.lane.b32.xlu1 %v258_v0, %s909_s24  ;;  %288 = vrot.lane.b32.xlu0 %v256_v1, %s909_s24  ;;  %v261_v4 = vld [vmem:[%s221_s11 + $0x14] sm:$0xf]  ;;  %v260_v5 = vld [vmem:[%s221_s11 + $0x10] sm:$0xf]  ;;  %v614_v16 = vld [vmem:[#allocation5] ss:$0 sm:$0xff] }
  0x70   : > { %v1136_v6 = vld [vmem:[%s221_s11 + $0x1c] sm:$0xf]  ;;  %v1138_v7 = vld [vmem:[%s221_s11 + $0x18] sm:$0xf]  ;;  %v615_v17 = vld [vmem:[#allocation5 + $0x1] ss:$0 sm:$0xff]  ;;  %v393_v20 = vmul.f32 %v614_v16, %v256_v1 }
  0x71   : > { %vm336_vm0 = vcmask 130048   ;;  %v623_v18 = vld [vmem:[#allocation7 + $0x1] ss:$0 sm:$0xff]  ;;  %v622_v19 = vld [vmem:[#allocation7] ss:$0 sm:$0xff]  ;;  %v394_v21 = vmul.f32 %v615_v17, %v257_v3  ;;  %vm465_vm1 = vcmask 257024  }
  0x72   : > { %v616_v24 = vld [vmem:[#allocation5 + $0x2] ss:$0 sm:$0xff]  ;;  %v617_v25 = vld [vmem:[#allocation5 + $0x3] ss:$0 sm:$0xff]  ;;  %v625_v30 = vld [vmem:[#allocation7 + $0x3] ss:$0 sm:$0xff] }
  0x73   : > { %294 = vrot.lane.b32.xlu1 %v259_v2, %s909_s24  ;;  %290 = vrot.lane.b32.xlu0 %v257_v3, %s909_s24  ;;  %v624_v31 = vld [vmem:[#allocation7 + $0x2] ss:$0 sm:$0xff]  ;;  %v395_v32 = vmul.f32 %v616_v24, %v258_v0  ;;  %v396_v33 = vmul.f32 %v617_v25, %v259_v2  ;;  %v619_v38 = vld [vmem:[#allocation5 + $0x5] ss:$0 sm:$0xff]  ;;  %v618_v39 = vld [vmem:[#allocation5 + $0x4] ss:$0 sm:$0xff] }
  0x74   : > { %s1150_s22 = scalar_lea.vmem [#allocation8], %s610_s28  ;;  %v627_v44 = vld [vmem:[#allocation7 + $0x5] ss:$0 sm:$0xff]  ;;  %v626_v45 = vld [vmem:[#allocation7 + $0x4] ss:$0 sm:$0xff]  ;;  %v398_v46 = vmul.f32 %v619_v38, %v261_v4  ;;  %v397_v47 = vmul.f32 %v618_v39, %v260_v5  ;;  %s636_s6 = sshll.u32 %s892_s15, 9 }
  0x75   : > { %v621_v52 = vld [vmem:[#allocation5 + $0x7] ss:$0 sm:$0xff]  ;;  %v620_v53 = vld [vmem:[#allocation5 + $0x6] ss:$0 sm:$0xff]  ;;  %v629_v58 = vld [vmem:[#allocation7 + $0x7] ss:$0 sm:$0xff]  ;;  %s1175_s30 = scalar_lea.hbm %s1233_s3, %s636_s6 }
  0x76   : > { %v628_v59 = vld [vmem:[#allocation7 + $0x6] ss:$0 sm:$0xff]  ;;  %v400_v60 = vmul.f32 %v621_v52, %v1136_v6  ;;  %v399_v61 = vmul.f32 %v620_v53, %v1138_v7  ;;  %s490_s7 = sshll.u32 %s1150_s22, 4  ;;  %s475_s15 = scalar_lea.sflag [#allocation4], %s1122_s25  ;;  %s1177_s7 = int_to_ptr.vmem [resolvable:$true] %s490_s7 }
  0x77   : > { %298 = vrot.lane.b32.xlu1 %v261_v4, %s909_s24  ;;  %296 = vrot.lane.b32.xlu0 %v260_v5, %s909_s24  ;;  %s814_s4 = scalar_lea.vmem %s1177_s7, 512  ;;  %p1248_p12 = scmp.ne.s32.totalorder %s1244_s27, 0 }
  0x78   : > { %p815_p8 = scmp.ne.s32.totalorder %s1177_s7, %s814_s4  ;;  %s911_s5 = smov [#allocation8]  }
  0x79   : > { %s818_s21 = sshll.u32 %s911_s5, 4  ;;  %s819_s21 = int_to_ptr.vmem [resolvable:$false] %s818_s21 }
  0x7a   : > { %p816_p1 = pnand %p815_p8, %p1248_p12  ;;  %s820_s9 = scalar_lea.vmem %s819_s21, 1024 }
  0x7b   : > { %302 = vrot.lane.b32.xlu1 %v1136_v6, %s909_s24  ;;  %300 = vrot.lane.b32.xlu0 %v1138_v7, %s909_s24  ;;  %p821_p3 = scmp.lt.s32.totalorder %s1177_s7, %s819_s21  ;;  %p822_p5 = scmp.lt.s32.totalorder %s820_s9, %s814_s4 }
  0x7c   : > { %p817_p10 = pneg %p816_p1 }
  0x7d   : > { %p823_p9 = por %p822_p5, %p821_p3 }
  0x7f   : > { %314 = vrot.lane.b32.xlu1 %v257_v3, %s910_s20  ;;  %312 = vrot.lane.b32.xlu0 %v256_v1, %s910_s20  ;;  %p824_p11 = pnand %p823_p9, %p817_p10 }
  0x83   : > { %318 = vrot.lane.b32.xlu1 %v259_v2, %s910_s20  ;;  %316 = vrot.lane.b32.xlu0 %v258_v0, %s910_s20 }
  0x87   : > { %322 = vrot.lane.b32.xlu1 %v261_v4, %s910_s20  ;;  %320 = vrot.lane.b32.xlu0 %v260_v5, %s910_s20 }
  0x8b   : > { %326 = vrot.lane.b32.xlu1 %v1136_v6, %s910_s20  ;;  %324 = vrot.lane.b32.xlu0 %v1138_v7, %s910_s20 }
  0xe1   : > { %v293_v8 = vpop.permute.xlu1 %292  ;;  %v289_v9 = vpop.permute.xlu0 %288 }
  0xe5   : > { %v295_v10 = vpop.permute.xlu1 %294  ;;  %v291_v11 = vpop.permute.xlu0 %290 }
  0xe9   : > { %v299_v12 = vpop.permute.xlu1 %298  ;;  %v297_v13 = vpop.permute.xlu0 %296 }
  0xed   : > { %v303_v14 = vpop.permute.xlu1 %302  ;;  %v301_v15 = vpop.permute.xlu0 %300 }
  0xf1   : > { %v315_v22 = vpop.permute.xlu1 %314  ;;  %v313_v23 = vpop.permute.xlu0 %312 }
  0xf2   : > { %v338_v26 = vsel %vm336_vm0, %v291_v11, %v315_v22  ;;  %v337_v27 = vsel %vm336_vm0, %v289_v9, %v313_v23 }
  0xf3   : > { %v450_v28 = vmul.f32 %v623_v18, %v338_v26  ;;  %v449_v29 = vmul.f32 %v622_v19, %v337_v27 }
  0xf5   : > { %v458_v34 = vadd.f32 %v450_v28, %v394_v21  ;;  %v457_v35 = vadd.f32 %v449_v29, %v393_v20  ;;  %v319_v36 = vpop.permute.xlu1 %318  ;;  %v317_v37 = vpop.permute.xlu0 %316 }
  0xf6   : > { %v340_v40 = vsel %vm336_vm0, %v295_v10, %v319_v36  ;;  %v339_v41 = vsel %vm336_vm0, %v293_v8, %v317_v37 }
  0xf7   : > { %467 = vst.msk [vmem:[%s1150_s22 + $0x4] sm:$0xf] %vm465_vm1, %v458_v34  ;;  %466 = vst.msk [vmem:[%s1150_s22] sm:$0xf] %vm465_vm1, %v457_v35  ;;  %v452_v42 = vmul.f32 %v625_v30, %v340_v40  ;;  %v451_v43 = vmul.f32 %v624_v31, %v339_v41 }
  0xf9   : > { %v460_v48 = vadd.f32 %v452_v42, %v396_v33  ;;  %v459_v49 = vadd.f32 %v451_v43, %v395_v32  ;;  %v323_v50 = vpop.permute.xlu1 %322  ;;  %v321_v51 = vpop.permute.xlu0 %320 }
  0xfa   : > { %v342_v54 = vsel %vm336_vm0, %v299_v12, %v323_v50  ;;  %v341_v55 = vsel %vm336_vm0, %v297_v13, %v321_v51 }
  0xfb   : > { %469 = vst.msk [vmem:[%s1150_s22 + $0xc] sm:$0xf] %vm465_vm1, %v460_v48  ;;  %468 = vst.msk [vmem:[%s1150_s22 + $0x8] sm:$0xf] %vm465_vm1, %v459_v49  ;;  %v454_v56 = vmul.f32 %v627_v44, %v342_v54  ;;  %v453_v57 = vmul.f32 %v626_v45, %v341_v55 }
  0xfd   : > { %v462_v62 = vadd.f32 %v454_v56, %v398_v46  ;;  %v461_v63 = vadd.f32 %v453_v57, %v397_v47  ;;  %v327_v0 = vpop.permute.xlu1 %326  ;;  %v325_v1 = vpop.permute.xlu0 %324 }
  0xfe   : > { %v344_v2 = vsel %vm336_vm0, %v303_v14, %v327_v0  ;;  %v343_v3 = vsel %vm336_vm0, %v301_v15, %v325_v1 }
  0xff   : > { %471 = vst.msk [vmem:[%s1150_s22 + $0x14] sm:$0xf] %vm465_vm1, %v462_v62  ;;  %470 = vst.msk [vmem:[%s1150_s22 + $0x10] sm:$0xf] %vm465_vm1, %v461_v63  ;;  %v456_v4 = vmul.f32 %v629_v58, %v344_v2  ;;  %v455_v5 = vmul.f32 %v628_v59, %v343_v3 }
 0x101   : > { %v464_v6 = vadd.f32 %v456_v4, %v400_v60  ;;  %v463_v7 = vadd.f32 %v455_v5, %v399_v61 }
 0x103   : > { %473 = vst.msk [vmem:[%s1150_s22 + $0x1c] sm:$0xf] %vm465_vm1, %v464_v6  ;;  %472 = vst.msk [vmem:[%s1150_s22 + $0x18] sm:$0xf] %vm465_vm1, %v463_v7 }
 0x104   : > { %827 = shalt.err (!%p824_p11)
}
 0x105   : > { %s828_s10 = scalar_lea.hbm %s1175_s30, 512  ;;  %s832_s11 = scalar_lea.hbm %s1233_s3, 1024 }
 0x106   : > { %p829_p0 = scmp.ne.s32.totalorder %s1175_s30, %s828_s10  ;;  %p833_p6 = scmp.lt.u32.totalorder %s1175_s30, %s1233_s3 }
 0x107   : > { %p834_p7 = scmp.lt.u32.totalorder %s832_s11, %s828_s10  ;;  %p836_p8 = scmp.lt.u32.totalorder %s828_s10, %s1175_s30 }
 0x108   : > { %p830_p4 = pnand %p829_p0, %p1248_p12 }
 0x109   : > { %p835_p2 = por %p834_p7, %p833_p6 }
 0x10a   : > { %p831_p13 = pneg %p830_p4 }
 0x10b   : > { %p837_p1 = por %p836_p8, %p835_p2 }
 0x10d   : > { %p838_p10 = pnand %p837_p1, %p831_p13 }
 0x10f   : > { %841 = shalt.err (!%p838_p10)
}
 0x110   : > { %s912_s22 = smov 64   ;;  %s913_s6 = smov 4  }
 0x111   : > { %647 = dma.vmem_to_hbm [thread:$0]  (%p1248_p12), %s1177_s7, 512, %s1175_s30, %s475_s15, %s912_s22, %s912_s22, %s913_s6  }
 0x112 PF: > { %s505_s8 = sand.u32 1, %s880_s12   ;;  %p1249_p3 = scmp.ne.s32.totalorder %s1241_s23, 0 }
 0x113   : > { %p1250_p5 = scmp.ge.s32.totalorder %s900_s17, 2  ;;  %s506_s26 = scalar_lea.sflag [#allocation4], %s505_s8 }
 0x115   : > { %p661_p9 = pnand %p1250_p5, %p1249_p3 }
 0x117   : > { %875 = dma.done.wait (!%p661_p9), %s506_s26, 512  }
 0x118   : > { %877 = vsyncadd (!%p661_p9), %s506_s26, 4294966784  ;;  %s20_s17 = sadd.s32 1, %s900_s17   ;;  %s1251_s12 = smov %s884_s13 }
 0x119   : > { %p17_p11 = scmp.ge.s32.totalorder %s20_s17, 4   ;;  %s1252_s13 = smov %s888_s14 }
 0x11a   : > { %s1253_s14 = smov %s1076_s18  ;;  %s1254_s15 = smov %s896_s16 }
 0x11b   : > { %s1255_s16 = smov %s1257_s19  ;;  %19 = sbr.rel (!%p17_p11) target bundleno = 7 (0x7), region = 87 }
 0x122   :  { %511 = vsyncpa [#allocation3], 1 }
 0x123   :  { %513 = vsyncpa [#allocation3 + $0x1], 1 }
 0x124   :  { %514 = vsyncpa [#allocation6], 1 }
 0x125   :  { %515 = vsyncpa [#allocation4], 1 }
 0x126   :  { %517 = vsyncpa [#allocation4 + $0x1], 1 }

</bundles_post_ra>
